<compile_context>
chip_gen: v6e
topology: v6e:2x2x1
jax: 0.10.0
libtpu: 0.0.40
codegen_flags: <defaults>
</compile_context>

<pallas_src>
import math
import jax
import jax.numpy as jnp
from jax import lax
from jax.experimental import pallas as pl
from jax.experimental.pallas import tpu as pltpu


_LN_EPS = 1e-5
_INV_SQRT2 = 1.0 / math.sqrt(2.0)


def _round_up(n, m):
    return ((n + m - 1) // m) * m


def _make_fused_kernel(hidden_real_dims):
    """Single fused kernel for the whole MLP (one batch tile per grid step).

    Ref order: x, (w, b, gamma, beta) per hidden layer, w_out, b_out, o.
    hidden_real_dims are the TRUE (unpadded) feature widths, used for exact
    LayerNorm statistics over zero-padded lanes.
    """
    hidden_real_dims = tuple(int(d) for d in hidden_real_dims)

    def kernel(*refs):
        x_ref = refs[0]
        o_ref = refs[-1]
        p_refs = refs[1:-1]

        h = x_ref[...]  # (TB, D_in_pad) f32; padded lanes / rows are exactly 0

        # Hidden blocks: Linear -> Dropout(eval: identity) -> LayerNorm -> GELU
        for li, d_real in enumerate(hidden_real_dims):
            w_ref, b_ref, g_ref, be_ref = p_refs[4 * li: 4 * li + 4]
            dp = w_ref.shape[1]

            # MXU matmul: bf16 x bf16 -> f32 accumulate.  Padded W columns are
            # zero, so padded y lanes are exactly 0.
            y = jnp.dot(h.astype(jnp.bfloat16), w_ref[...],
                        preferred_element_type=jnp.float32)
            y = y + b_ref[...]  # f32 bias add (padded lanes stay 0)

            # LayerNorm over the TRUE width d_real.  Subtractive variance
            # ((y - mean)^2), lane-masked so padded lanes neither pollute the
            # statistics nor become nonzero for the next matmul.
            inv_d = 1.0 / float(d_real)
            mean = jnp.sum(y, axis=-1, keepdims=True) * inv_d
            if d_real == dp:
                yc = y - mean
            else:
                lane = lax.broadcasted_iota(jnp.int32, (1, dp), 1)
                yc = jnp.where(lane < d_real, y - mean, 0.0)
            var = jnp.sum(yc * yc, axis=-1, keepdims=True) * inv_d
            inv_std = lax.rsqrt(var + _LN_EPS)

            # Normalize + affine (gamma folded into the rsqrt scale) + exact
            # erf GELU (nn.GELU() default).  GELU(0) = 0 and beta_pad = 0, so
            # padded lanes stay exactly 0.
            y_ln = yc * (g_ref[...] * inv_std) + be_ref[...]
            h = 0.5 * y_ln * (1.0 + lax.erf(y_ln * _INV_SQRT2))

        # Final Linear.
        w_ref, b_ref = p_refs[-2], p_refs[-1]
        out = jnp.dot(h.astype(jnp.bfloat16), w_ref[...],
                      preferred_element_type=jnp.float32)
        o_ref[...] = (out + b_ref[...]).astype(o_ref.dtype)

    return kernel


def make_mlp_forward(input_size, output_size, hidden_sizes, batch_tile=256):
    """Returns a jitted forward(x, hidden_params_padded, out_params_padded)."""
    in_pad = _round_up(input_size, 128)
    out_pad = _round_up(output_size, 128)
    hidden_pads = [_round_up(h, 128) for h in hidden_sizes]
    kernel = _make_fused_kernel(hidden_sizes)

    @jax.jit
    def forward(x, hidden_params, out_params):
        B = x.shape[0]
        # Batch tile: up to `batch_tile` real rows per grid step (fills the MXU
        # rows at large batches); tiny batches collapse to a single 8-row step.
        TB = min(batch_tile, _round_up(max(B, 8), 8))
        B_pad = _round_up(max(B, TB), TB)
        n_tiles = B_pad // TB

        # Lane/sublane-aligned input slab; padded rows/lanes are zero.  This is
        # a single pad op fused inside the same jit as the pallas_call; callers
        # with pre-aligned batches pay nothing (zero-width pad is elided).
        x_pad = jnp.pad(x.astype(jnp.float32),
                        ((0, B_pad - B), (0, in_pad - input_size)))

        flat = []
        for p in hidden_params:
            flat += [p["w"], p["b"], p["gamma"], p["beta"]]
        flat += [out_params["w"], out_params["b"]]

        # Activation tiles stream over the batch grid; parameters are mapped to
        # a constant block index so they stay VMEM-resident across grid steps.
        x_spec = pl.BlockSpec((TB, in_pad), lambda i: (i, 0))
        o_spec = pl.BlockSpec((TB, out_pad), lambda i: (i, 0))
        param_specs = [pl.BlockSpec(tuple(p.shape), lambda i: (0, 0)) for p in flat]

        # Explicit VMEM budget sized from the actual footprint (bf16 weights
        # halve it); capped at v7x's 64 MiB physical VMEM.
        param_bytes = sum(int(p.size) * p.dtype.itemsize for p in flat)
        max_pad = max(hidden_pads + [in_pad, out_pad])
        act_tile_bytes = TB * (in_pad + out_pad) * 4
        epilogue_bytes = 6 * TB * max_pad * 4  # in-kernel f32 temporaries margin
        vmem_limit = 2 * param_bytes + 2 * act_tile_bytes + epilogue_bytes + (1 << 20)
        vmem_limit = int(min(max(vmem_limit, 16 << 20), 64 << 20))
        # TODO(synk): at configs whose padded bf16 params + activations approach
        # ~48-56 MiB (v7x has only 64 MiB VMEM), stop keeping the whole net
        # resident: give weight refs memory_space=pl.ANY and double-buffer
        # per-layer weights with pltpu.make_async_copy, prefetching layer i+1's
        # W while layer i's matmul runs.

        out_padded = pl.pallas_call(
            kernel,
            out_shape=jax.ShapeDtypeStruct((B_pad, out_pad), jnp.float32),
            grid=(n_tiles,),
            in_specs=[x_spec] + param_specs,
            out_specs=o_spec,
            compiler_params=pltpu.CompilerParams(
                dimension_semantics=("parallel",),
                vmem_limit_bytes=vmem_limit),
        )(x_pad, *flat)

        # Strip padding (the kernel's own output write is lane-dense).
        return out_padded[:B, :output_size]

    return forward


# ----------------------------- parameter setup -----------------------------

def init_params(key, input_size, output_size, hidden_sizes):
    """Real-shaped f32 params with nn.Linear-style U(-1/sqrt(fan_in), +) init."""
    hidden = []
    prev = input_size
    for h in hidden_sizes:
        key, kw, kb = jax.random.split(key, 3)
        bound = 1.0 / math.sqrt(prev)
        w = jax.random.uniform(kw, (prev, h), jnp.float32, -bound, bound)
        b = jax.random.uniform(kb, (1, h), jnp.float32, -bound, bound)
        gamma = jnp.ones((1, h), jnp.float32)   # LayerNorm weight
        beta = jnp.zeros((1, h), jnp.float32)   # LayerNorm bias
        hidden.append(dict(w=w, b=b, gamma=gamma, beta=beta))
        prev = h
    key, kw, kb = jax.random.split(key, 3)
    bound = 1.0 / math.sqrt(prev)
    w_out = jax.random.uniform(kw, (prev, output_size), jnp.float32, -bound, bound)
    b_out = jax.random.uniform(kb, (1, output_size), jnp.float32, -bound, bound)
    return hidden, dict(w=w_out, b=b_out)


def pad_params(hidden_params, out_params, input_size, output_size, hidden_sizes):
    """Zero-pad every feature dim to a multiple of 128 lanes.

    Weights are stored in bf16 (MXU operands); biases / gamma / beta stay f32
    (elementwise epilogue).  Zero padding is exact in both dtypes.
    """
    def pad2(a, r_pad, c_pad, dtype):
        out = jnp.zeros((r_pad, c_pad), dtype)
        return out.at[: a.shape[0], : a.shape[1]].set(a.astype(dtype))

    padded_hidden = []
    prev_pad = _round_up(input_size, 128)
    for p, h in zip(hidden_params, hidden_sizes):
        h_pad = _round_up(h, 128)
        padded_hidden.append(dict(
            w=pad2(p["w"], prev_pad, h_pad, jnp.bfloat16),
            b=pad2(p["b"], 1, h_pad, jnp.float32),
            gamma=pad2(p["gamma"], 1, h_pad, jnp.float32),  # zeros beyond real width
            beta=pad2(p["beta"], 1, h_pad, jnp.float32),
        ))
        prev_pad = h_pad
    out_pad = _round_up(output_size, 128)
    padded_out = dict(
        w=pad2(out_params["w"], prev_pad, out_pad, jnp.bfloat16),
        b=pad2(out_params["b"], 1, out_pad, jnp.float32),
    )
    return padded_hidden, padded_out


# ------------------------------- reference ---------------------------------

def _reference_forward(x, hidden_params, out_params, matmul_dtype=jnp.float32):
    """Pure-JAX reference on UNPADDED params (PyTorch eval semantics).

    matmul_dtype=jnp.bfloat16 mirrors the kernel's operand casts (f32 accum)
    so the kernel math can be checked tightly; f32 gives PyTorch parity.
    """
    h = x
    for p in hidden_params:
        y = jnp.dot(h.astype(matmul_dtype), p["w"].astype(matmul_dtype),
                    preferred_element_type=jnp.float32) + p["b"]
        mean = jnp.mean(y, axis=-1, keepdims=True)
        var = jnp.mean((y - mean) ** 2, axis=-1, keepdims=True)
        y = (y - mean) / jnp.sqrt(var + _LN_EPS) * p["gamma"] + p["beta"]
        h = 0.5 * y * (1.0 + lax.erf(y * _INV_SQRT2))
    return jnp.dot(h.astype(matmul_dtype), out_params["w"].astype(matmul_dtype),
                   preferred_element_type=jnp.float32) + out_params["b"]


# --------------------------------- main -------------------------------------

if __name__ == "__main__":
    # Small shapes consistent with the module: flat feature vectors in, flat
    # trajectory out.  hidden_sizes is a scaled-down analogue of the default
    # [1280, 1024, ..., 256] ladder.
    input_size = 16
    output_size = 24
    hidden_sizes = [64, 48, 32]

    key = jax.random.PRNGKey(0)
    hidden_params, out_params = init_params(key, input_size, output_size, hidden_sizes)
    hidden_padded, out_padded_p = pad_params(
        hidden_params, out_params, input_size, output_size, hidden_sizes)

    # Dropout(p=0.1) is identity in eval mode; no-op here.

    # Case 1: tiny batch (single grid step).
    key, kx = jax.random.split(key)
    x_small = jax.random.normal(kx, (2, input_size), jnp.float32)
    forward = make_mlp_forward(input_size, output_size, hidden_sizes)
    out_small = jax.block_until_ready(forward(x_small, hidden_padded, out_padded_p))
    assert out_small.shape == (2, output_size)
    ref_bf16 = _reference_forward(x_small, hidden_params, out_params, jnp.bfloat16)
    ref_f32 = _reference_forward(x_small, hidden_params, out_params, jnp.float32)
    assert jnp.allclose(out_small, ref_bf16, atol=5e-3, rtol=5e-3), "kernel-math mismatch"
    assert jnp.allclose(out_small, ref_f32, atol=3e-2, rtol=3e-2), "drift vs f32 reference"

    # Case 2: larger batch exercising the parallel batch grid (3 tiles x 16 rows,
    # with row padding on the last tile).
    key, kx2 = jax.random.split(key)
    x_big = jax.random.normal(kx2, (40, input_size), jnp.float32)
    forward_tiled = make_mlp_forward(input_size, output_size, hidden_sizes, batch_tile=16)
    out_big = jax.block_until_ready(forward_tiled(x_big, hidden_padded, out_padded_p))
    assert out_big.shape == (40, output_size)
    ref_bf16_b = _reference_forward(x_big, hidden_params, out_params, jnp.bfloat16)
    ref_f32_b = _reference_forward(x_big, hidden_params, out_params, jnp.float32)
    assert jnp.allclose(out_big, ref_bf16_b, atol=5e-3, rtol=5e-3), "kernel-math mismatch (tiled)"
    assert jnp.allclose(out_big, ref_f32_b, atol=3e-2, rtol=3e-2), "drift vs f32 reference (tiled)"

    print("KERNEL_OK")
</pallas_src>

<mosaic_0001>
module attributes {stable_mosaic.version = 11 : i64} {
  func.func @kernel(%arg0: i32, %arg1: memref<8x128xf32, #tpu.memory_space<vmem>>, %arg2: memref<128x128xbf16, #tpu.memory_space<vmem>>, %arg3: memref<1x128xf32, #tpu.memory_space<vmem>>, %arg4: memref<1x128xf32, #tpu.memory_space<vmem>>, %arg5: memref<1x128xf32, #tpu.memory_space<vmem>>, %arg6: memref<128x128xbf16, #tpu.memory_space<vmem>>, %arg7: memref<1x128xf32, #tpu.memory_space<vmem>>, %arg8: memref<1x128xf32, #tpu.memory_space<vmem>>, %arg9: memref<1x128xf32, #tpu.memory_space<vmem>>, %arg10: memref<128x128xbf16, #tpu.memory_space<vmem>>, %arg11: memref<1x128xf32, #tpu.memory_space<vmem>>, %arg12: memref<1x128xf32, #tpu.memory_space<vmem>>, %arg13: memref<1x128xf32, #tpu.memory_space<vmem>>, %arg14: memref<128x128xbf16, #tpu.memory_space<vmem>>, %arg15: memref<1x128xf32, #tpu.memory_space<vmem>>, %arg16: memref<8x128xf32, #tpu.memory_space<vmem>>) attributes {dimension_semantics = [#tpu.dimension_semantics<parallel>], iteration_bounds = array<i64: 1>, scalar_prefetch = 0 : i64, scratch_operands = 0 : i64, tpu.core_type = #tpu.core_type<tc>, window_params = [{transform_indices = @transform_0, window_bounds = array<i64: 8, 128>}, {pipeline_mode = #tpu.pipeline_mode<synchronous>, transform_indices = @transform_1, window_bounds = array<i64: 128, 128>}, {pipeline_mode = #tpu.pipeline_mode<synchronous>, transform_indices = @transform_2, window_bounds = array<i64: 1, 128>}, {pipeline_mode = #tpu.pipeline_mode<synchronous>, transform_indices = @transform_3, window_bounds = array<i64: 1, 128>}, {pipeline_mode = #tpu.pipeline_mode<synchronous>, transform_indices = @transform_4, window_bounds = array<i64: 1, 128>}, {pipeline_mode = #tpu.pipeline_mode<synchronous>, transform_indices = @transform_5, window_bounds = array<i64: 128, 128>}, {pipeline_mode = #tpu.pipeline_mode<synchronous>, transform_indices = @transform_6, window_bounds = array<i64: 1, 128>}, {pipeline_mode = #tpu.pipeline_mode<synchronous>, transform_indices = @transform_7, window_bounds = array<i64: 1, 128>}, {pipeline_mode = #tpu.pipeline_mode<synchronous>, transform_indices = @transform_8, window_bounds = array<i64: 1, 128>}, {pipeline_mode = #tpu.pipeline_mode<synchronous>, transform_indices = @transform_9, window_bounds = array<i64: 128, 128>}, {pipeline_mode = #tpu.pipeline_mode<synchronous>, transform_indices = @transform_10, window_bounds = array<i64: 1, 128>}, {pipeline_mode = #tpu.pipeline_mode<synchronous>, transform_indices = @transform_11, window_bounds = array<i64: 1, 128>}, {pipeline_mode = #tpu.pipeline_mode<synchronous>, transform_indices = @transform_12, window_bounds = array<i64: 1, 128>}, {pipeline_mode = #tpu.pipeline_mode<synchronous>, transform_indices = @transform_13, window_bounds = array<i64: 128, 128>}, {pipeline_mode = #tpu.pipeline_mode<synchronous>, transform_indices = @transform_14, window_bounds = array<i64: 1, 128>}, {transform_indices = @transform_15, window_bounds = array<i64: 8, 128>}]} {
    %c0 = arith.constant 0 : index
    %c0_0 = arith.constant 0 : index
    %0 = vector.load %arg1[%c0, %c0_0] : memref<8x128xf32, #tpu.memory_space<vmem>>, vector<8x128xf32>
    %1 = arith.truncf %0 : vector<8x128xf32> to vector<8x128xbf16>
    %c0_1 = arith.constant 0 : index
    %c0_2 = arith.constant 0 : index
    %2 = vector.load %arg2[%c0_1, %c0_2] : memref<128x128xbf16, #tpu.memory_space<vmem>>, vector<128x128xbf16>
    %cst = arith.constant dense<0.000000e+00> : vector<8x128xf32>
    %3 = tpu.matmul %1, %2, %cst {dimension_numbers = #tpu.dot_dimension_numbers<[1], [0], [0], [1], [0, 0, 1, 1], [], []>} : vector<8x128xbf16>, vector<128x128xbf16>, vector<8x128xf32> -> vector<8x128xf32>
    %c0_3 = arith.constant 0 : index
    %c0_4 = arith.constant 0 : index
    %4 = vector.load %arg3[%c0_3, %c0_4] : memref<1x128xf32, #tpu.memory_space<vmem>>, vector<1x128xf32>
    %5 = vector.broadcast %4 : vector<1x128xf32> to vector<8x128xf32>
    %6 = arith.addf %3, %5 : vector<8x128xf32>
    %cst_5 = arith.constant dense<0.000000e+00> : vector<8xf32>
    %7 = vector.multi_reduction <add>, %6, %cst_5 [1] : vector<8x128xf32> to vector<8xf32>
    %8 = vector.shape_cast %7 : vector<8xf32> to vector<8x1xf32>
    %cst_6 = arith.constant 1.562500e-02 : f32
    %9 = vector.broadcast %cst_6 : f32 to vector<8x1xf32>
    %10 = arith.mulf %8, %9 : vector<8x1xf32>
    %11 = tpu.iota {dimensions = array<i32: 1>} : vector<1x128xi32>
    %c64_i32 = arith.constant 64 : i32
    %12 = vector.broadcast %c64_i32 : i32 to vector<1x128xi32>
    %13 = arith.cmpi slt, %11, %12 : vector<1x128xi32>
    %14 = vector.broadcast %10 : vector<8x1xf32> to vector<8x128xf32>
    %15 = arith.subf %6, %14 : vector<8x128xf32>
    %cst_7 = arith.constant 0.000000e+00 : f32
    %16 = vector.shape_cast %13 : vector<1x128xi1> to vector<1x128xi1>
    %17 = vector.broadcast %16 : vector<1x128xi1> to vector<8x128xi1>
    %18 = vector.broadcast %cst_7 : f32 to vector<8x128xf32>
    %19 = arith.select %17, %15, %18 : vector<8x128xi1>, vector<8x128xf32>
    %20 = arith.mulf %19, %19 : vector<8x128xf32>
    %cst_8 = arith.constant dense<0.000000e+00> : vector<8xf32>
    %21 = vector.multi_reduction <add>, %20, %cst_8 [1] : vector<8x128xf32> to vector<8xf32>
    %22 = vector.shape_cast %21 : vector<8xf32> to vector<8x1xf32>
    %cst_9 = arith.constant 1.562500e-02 : f32
    %23 = vector.broadcast %cst_9 : f32 to vector<8x1xf32>
    %24 = arith.mulf %22, %23 : vector<8x1xf32>
    %cst_10 = arith.constant 9.99999974E-6 : f32
    %25 = vector.broadcast %cst_10 : f32 to vector<8x1xf32>
    %26 = arith.addf %24, %25 : vector<8x1xf32>
    %27 = math.rsqrt %26 : vector<8x1xf32>
    %c0_11 = arith.constant 0 : index
    %c0_12 = arith.constant 0 : index
    %28 = vector.load %arg4[%c0_11, %c0_12] : memref<1x128xf32, #tpu.memory_space<vmem>>, vector<1x128xf32>
    %29 = vector.broadcast %28 : vector<1x128xf32> to vector<8x128xf32>
    %30 = vector.broadcast %27 : vector<8x1xf32> to vector<8x128xf32>
    %31 = arith.mulf %29, %30 : vector<8x128xf32>
    %32 = arith.mulf %19, %31 : vector<8x128xf32>
    %c0_13 = arith.constant 0 : index
    %c0_14 = arith.constant 0 : index
    %33 = vector.load %arg5[%c0_13, %c0_14] : memref<1x128xf32, #tpu.memory_space<vmem>>, vector<1x128xf32>
    %34 = vector.broadcast %33 : vector<1x128xf32> to vector<8x128xf32>
    %35 = arith.addf %32, %34 : vector<8x128xf32>
    %cst_15 = arith.constant 5.000000e-01 : f32
    %36 = vector.broadcast %cst_15 : f32 to vector<8x128xf32>
    %37 = arith.mulf %36, %35 : vector<8x128xf32>
    %cst_16 = arith.constant 0.707106769 : f32
    %38 = vector.broadcast %cst_16 : f32 to vector<8x128xf32>
    %39 = arith.mulf %35, %38 : vector<8x128xf32>
    %40 = math.erf %39 : vector<8x128xf32>
    %cst_17 = arith.constant 1.000000e+00 : f32
    %41 = vector.broadcast %cst_17 : f32 to vector<8x128xf32>
    %42 = arith.addf %41, %40 : vector<8x128xf32>
    %43 = arith.mulf %37, %42 : vector<8x128xf32>
    %44 = arith.truncf %43 : vector<8x128xf32> to vector<8x128xbf16>
    %c0_18 = arith.constant 0 : index
    %c0_19 = arith.constant 0 : index
    %45 = vector.load %arg6[%c0_18, %c0_19] : memref<128x128xbf16, #tpu.memory_space<vmem>>, vector<128x128xbf16>
    %cst_20 = arith.constant dense<0.000000e+00> : vector<8x128xf32>
    %46 = tpu.matmul %44, %45, %cst_20 {dimension_numbers = #tpu.dot_dimension_numbers<[1], [0], [0], [1], [0, 0, 1, 1], [], []>} : vector<8x128xbf16>, vector<128x128xbf16>, vector<8x128xf32> -> vector<8x128xf32>
    %c0_21 = arith.constant 0 : index
    %c0_22 = arith.constant 0 : index
    %47 = vector.load %arg7[%c0_21, %c0_22] : memref<1x128xf32, #tpu.memory_space<vmem>>, vector<1x128xf32>
    %48 = vector.broadcast %47 : vector<1x128xf32> to vector<8x128xf32>
    %49 = arith.addf %46, %48 : vector<8x128xf32>
    %cst_23 = arith.constant dense<0.000000e+00> : vector<8xf32>
    %50 = vector.multi_reduction <add>, %49, %cst_23 [1] : vector<8x128xf32> to vector<8xf32>
    %51 = vector.shape_cast %50 : vector<8xf32> to vector<8x1xf32>
    %cst_24 = arith.constant 0.020833334 : f32
    %52 = vector.broadcast %cst_24 : f32 to vector<8x1xf32>
    %53 = arith.mulf %51, %52 : vector<8x1xf32>
    %54 = tpu.iota {dimensions = array<i32: 1>} : vector<1x128xi32>
    %c48_i32 = arith.constant 48 : i32
    %55 = vector.broadcast %c48_i32 : i32 to vector<1x128xi32>
    %56 = arith.cmpi slt, %54, %55 : vector<1x128xi32>
    %57 = vector.broadcast %53 : vector<8x1xf32> to vector<8x128xf32>
    %58 = arith.subf %49, %57 : vector<8x128xf32>
    %cst_25 = arith.constant 0.000000e+00 : f32
    %59 = vector.shape_cast %56 : vector<1x128xi1> to vector<1x128xi1>
    %60 = vector.broadcast %59 : vector<1x128xi1> to vector<8x128xi1>
    %61 = vector.broadcast %cst_25 : f32 to vector<8x128xf32>
    %62 = arith.select %60, %58, %61 : vector<8x128xi1>, vector<8x128xf32>
    %63 = arith.mulf %62, %62 : vector<8x128xf32>
    %cst_26 = arith.constant dense<0.000000e+00> : vector<8xf32>
    %64 = vector.multi_reduction <add>, %63, %cst_26 [1] : vector<8x128xf32> to vector<8xf32>
    %65 = vector.shape_cast %64 : vector<8xf32> to vector<8x1xf32>
    %cst_27 = arith.constant 0.020833334 : f32
    %66 = vector.broadcast %cst_27 : f32 to vector<8x1xf32>
    %67 = arith.mulf %65, %66 : vector<8x1xf32>
    %cst_28 = arith.constant 9.99999974E-6 : f32
    %68 = vector.broadcast %cst_28 : f32 to vector<8x1xf32>
    %69 = arith.addf %67, %68 : vector<8x1xf32>
    %70 = math.rsqrt %69 : vector<8x1xf32>
    %c0_29 = arith.constant 0 : index
    %c0_30 = arith.constant 0 : index
    %71 = vector.load %arg8[%c0_29, %c0_30] : memref<1x128xf32, #tpu.memory_space<vmem>>, vector<1x128xf32>
    %72 = vector.broadcast %71 : vector<1x128xf32> to vector<8x128xf32>
    %73 = vector.broadcast %70 : vector<8x1xf32> to vector<8x128xf32>
    %74 = arith.mulf %72, %73 : vector<8x128xf32>
    %75 = arith.mulf %62, %74 : vector<8x128xf32>
    %c0_31 = arith.constant 0 : index
    %c0_32 = arith.constant 0 : index
    %76 = vector.load %arg9[%c0_31, %c0_32] : memref<1x128xf32, #tpu.memory_space<vmem>>, vector<1x128xf32>
    %77 = vector.broadcast %76 : vector<1x128xf32> to vector<8x128xf32>
    %78 = arith.addf %75, %77 : vector<8x128xf32>
    %cst_33 = arith.constant 5.000000e-01 : f32
    %79 = vector.broadcast %cst_33 : f32 to vector<8x128xf32>
    %80 = arith.mulf %79, %78 : vector<8x128xf32>
    %cst_34 = arith.constant 0.707106769 : f32
    %81 = vector.broadcast %cst_34 : f32 to vector<8x128xf32>
    %82 = arith.mulf %78, %81 : vector<8x128xf32>
    %83 = math.erf %82 : vector<8x128xf32>
    %cst_35 = arith.constant 1.000000e+00 : f32
    %84 = vector.broadcast %cst_35 : f32 to vector<8x128xf32>
    %85 = arith.addf %84, %83 : vector<8x128xf32>
    %86 = arith.mulf %80, %85 : vector<8x128xf32>
    %87 = arith.truncf %86 : vector<8x128xf32> to vector<8x128xbf16>
    %c0_36 = arith.constant 0 : index
    %c0_37 = arith.constant 0 : index
    %88 = vector.load %arg10[%c0_36, %c0_37] : memref<128x128xbf16, #tpu.memory_space<vmem>>, vector<128x128xbf16>
    %cst_38 = arith.constant dense<0.000000e+00> : vector<8x128xf32>
    %89 = tpu.matmul %87, %88, %cst_38 {dimension_numbers = #tpu.dot_dimension_numbers<[1], [0], [0], [1], [0, 0, 1, 1], [], []>} : vector<8x128xbf16>, vector<128x128xbf16>, vector<8x128xf32> -> vector<8x128xf32>
    %c0_39 = arith.constant 0 : index
    %c0_40 = arith.constant 0 : index
    %90 = vector.load %arg11[%c0_39, %c0_40] : memref<1x128xf32, #tpu.memory_space<vmem>>, vector<1x128xf32>
    %91 = vector.broadcast %90 : vector<1x128xf32> to vector<8x128xf32>
    %92 = arith.addf %89, %91 : vector<8x128xf32>
    %cst_41 = arith.constant dense<0.000000e+00> : vector<8xf32>
    %93 = vector.multi_reduction <add>, %92, %cst_41 [1] : vector<8x128xf32> to vector<8xf32>
    %94 = vector.shape_cast %93 : vector<8xf32> to vector<8x1xf32>
    %cst_42 = arith.constant 3.125000e-02 : f32
    %95 = vector.broadcast %cst_42 : f32 to vector<8x1xf32>
    %96 = arith.mulf %94, %95 : vector<8x1xf32>
    %97 = tpu.iota {dimensions = array<i32: 1>} : vector<1x128xi32>
    %c32_i32 = arith.constant 32 : i32
    %98 = vector.broadcast %c32_i32 : i32 to vector<1x128xi32>
    %99 = arith.cmpi slt, %97, %98 : vector<1x128xi32>
    %100 = vector.broadcast %96 : vector<8x1xf32> to vector<8x128xf32>
    %101 = arith.subf %92, %100 : vector<8x128xf32>
    %cst_43 = arith.constant 0.000000e+00 : f32
    %102 = vector.shape_cast %99 : vector<1x128xi1> to vector<1x128xi1>
    %103 = vector.broadcast %102 : vector<1x128xi1> to vector<8x128xi1>
    %104 = vector.broadcast %cst_43 : f32 to vector<8x128xf32>
    %105 = arith.select %103, %101, %104 : vector<8x128xi1>, vector<8x128xf32>
    %106 = arith.mulf %105, %105 : vector<8x128xf32>
    %cst_44 = arith.constant dense<0.000000e+00> : vector<8xf32>
    %107 = vector.multi_reduction <add>, %106, %cst_44 [1] : vector<8x128xf32> to vector<8xf32>
    %108 = vector.shape_cast %107 : vector<8xf32> to vector<8x1xf32>
    %cst_45 = arith.constant 3.125000e-02 : f32
    %109 = vector.broadcast %cst_45 : f32 to vector<8x1xf32>
    %110 = arith.mulf %108, %109 : vector<8x1xf32>
    %cst_46 = arith.constant 9.99999974E-6 : f32
    %111 = vector.broadcast %cst_46 : f32 to vector<8x1xf32>
    %112 = arith.addf %110, %111 : vector<8x1xf32>
    %113 = math.rsqrt %112 : vector<8x1xf32>
    %c0_47 = arith.constant 0 : index
    %c0_48 = arith.constant 0 : index
    %114 = vector.load %arg12[%c0_47, %c0_48] : memref<1x128xf32, #tpu.memory_space<vmem>>, vector<1x128xf32>
    %115 = vector.broadcast %114 : vector<1x128xf32> to vector<8x128xf32>
    %116 = vector.broadcast %113 : vector<8x1xf32> to vector<8x128xf32>
    %117 = arith.mulf %115, %116 : vector<8x128xf32>
    %118 = arith.mulf %105, %117 : vector<8x128xf32>
    %c0_49 = arith.constant 0 : index
    %c0_50 = arith.constant 0 : index
    %119 = vector.load %arg13[%c0_49, %c0_50] : memref<1x128xf32, #tpu.memory_space<vmem>>, vector<1x128xf32>
    %120 = vector.broadcast %119 : vector<1x128xf32> to vector<8x128xf32>
    %121 = arith.addf %118, %120 : vector<8x128xf32>
    %cst_51 = arith.constant 5.000000e-01 : f32
    %122 = vector.broadcast %cst_51 : f32 to vector<8x128xf32>
    %123 = arith.mulf %122, %121 : vector<8x128xf32>
    %cst_52 = arith.constant 0.707106769 : f32
    %124 = vector.broadcast %cst_52 : f32 to vector<8x128xf32>
    %125 = arith.mulf %121, %124 : vector<8x128xf32>
    %126 = math.erf %125 : vector<8x128xf32>
    %cst_53 = arith.constant 1.000000e+00 : f32
    %127 = vector.broadcast %cst_53 : f32 to vector<8x128xf32>
    %128 = arith.addf %127, %126 : vector<8x128xf32>
    %129 = arith.mulf %123, %128 : vector<8x128xf32>
    %130 = arith.truncf %129 : vector<8x128xf32> to vector<8x128xbf16>
    %c0_54 = arith.constant 0 : index
    %c0_55 = arith.constant 0 : index
    %131 = vector.load %arg14[%c0_54, %c0_55] : memref<128x128xbf16, #tpu.memory_space<vmem>>, vector<128x128xbf16>
    %cst_56 = arith.constant dense<0.000000e+00> : vector<8x128xf32>
    %132 = tpu.matmul %130, %131, %cst_56 {dimension_numbers = #tpu.dot_dimension_numbers<[1], [0], [0], [1], [0, 0, 1, 1], [], []>} : vector<8x128xbf16>, vector<128x128xbf16>, vector<8x128xf32> -> vector<8x128xf32>
    %c0_57 = arith.constant 0 : index
    %c0_58 = arith.constant 0 : index
    %133 = vector.load %arg15[%c0_57, %c0_58] : memref<1x128xf32, #tpu.memory_space<vmem>>, vector<1x128xf32>
    %134 = vector.broadcast %133 : vector<1x128xf32> to vector<8x128xf32>
    %135 = arith.addf %132, %134 : vector<8x128xf32>
    %c0_59 = arith.constant 0 : index
    %c0_60 = arith.constant 0 : index
    %136 = vector.load %arg16[%c0_59, %c0_60] : memref<8x128xf32, #tpu.memory_space<vmem>>, vector<8x128xf32>
    tpu.vector_store %arg16[%c0_59, %c0_60], %135 {strides = array<i32>} : memref<8x128xf32, #tpu.memory_space<vmem>>, vector<8x128xf32>,
    return
  }
  func.func @transform_0(%arg0: i32) -> (i32, i32) {
    %c0_i32 = arith.constant 0 : i32
    %c0_i32_0 = arith.constant 0 : i32
    return %arg0, %c0_i32 : i32, i32
  }
  func.func @transform_1(%arg0: i32) -> (i32, i32) {
    %c0_i32 = arith.constant 0 : i32
    %c0_i32_0 = arith.constant 0 : i32
    %c0_i32_1 = arith.constant 0 : i32
    return %c0_i32, %c0_i32_0 : i32, i32
  }
  func.func @transform_2(%arg0: i32) -> (i32, i32) {
    %c0_i32 = arith.constant 0 : i32
    %c0_i32_0 = arith.constant 0 : i32
    %c0_i32_1 = arith.constant 0 : i32
    return %c0_i32, %c0_i32_0 : i32, i32
  }
  func.func @transform_3(%arg0: i32) -> (i32, i32) {
    %c0_i32 = arith.constant 0 : i32
    %c0_i32_0 = arith.constant 0 : i32
    %c0_i32_1 = arith.constant 0 : i32
    return %c0_i32, %c0_i32_0 : i32, i32
  }
  func.func @transform_4(%arg0: i32) -> (i32, i32) {
    %c0_i32 = arith.constant 0 : i32
    %c0_i32_0 = arith.constant 0 : i32
    %c0_i32_1 = arith.constant 0 : i32
    return %c0_i32, %c0_i32_0 : i32, i32
  }
  func.func @transform_5(%arg0: i32) -> (i32, i32) {
    %c0_i32 = arith.constant 0 : i32
    %c0_i32_0 = arith.constant 0 : i32
    %c0_i32_1 = arith.constant 0 : i32
    return %c0_i32, %c0_i32_0 : i32, i32
  }
  func.func @transform_6(%arg0: i32) -> (i32, i32) {
    %c0_i32 = arith.constant 0 : i32
    %c0_i32_0 = arith.constant 0 : i32
    %c0_i32_1 = arith.constant 0 : i32
    return %c0_i32, %c0_i32_0 : i32, i32
  }
  func.func @transform_7(%arg0: i32) -> (i32, i32) {
    %c0_i32 = arith.constant 0 : i32
    %c0_i32_0 = arith.constant 0 : i32
    %c0_i32_1 = arith.constant 0 : i32
    return %c0_i32, %c0_i32_0 : i32, i32
  }
  func.func @transform_8(%arg0: i32) -> (i32, i32) {
    %c0_i32 = arith.constant 0 : i32
    %c0_i32_0 = arith.constant 0 : i32
    %c0_i32_1 = arith.constant 0 : i32
    return %c0_i32, %c0_i32_0 : i32, i32
  }
  func.func @transform_9(%arg0: i32) -> (i32, i32) {
    %c0_i32 = arith.constant 0 : i32
    %c0_i32_0 = arith.constant 0 : i32
    %c0_i32_1 = arith.constant 0 : i32
    return %c0_i32, %c0_i32_0 : i32, i32
  }
  func.func @transform_10(%arg0: i32) -> (i32, i32) {
    %c0_i32 = arith.constant 0 : i32
    %c0_i32_0 = arith.constant 0 : i32
    %c0_i32_1 = arith.constant 0 : i32
    return %c0_i32, %c0_i32_0 : i32, i32
  }
  func.func @transform_11(%arg0: i32) -> (i32, i32) {
    %c0_i32 = arith.constant 0 : i32
    %c0_i32_0 = arith.constant 0 : i32
    %c0_i32_1 = arith.constant 0 : i32
    return %c0_i32, %c0_i32_0 : i32, i32
  }
  func.func @transform_12(%arg0: i32) -> (i32, i32) {
    %c0_i32 = arith.constant 0 : i32
    %c0_i32_0 = arith.constant 0 : i32
    %c0_i32_1 = arith.constant 0 : i32
    return %c0_i32, %c0_i32_0 : i32, i32
  }
  func.func @transform_13(%arg0: i32) -> (i32, i32) {
    %c0_i32 = arith.constant 0 : i32
    %c0_i32_0 = arith.constant 0 : i32
    %c0_i32_1 = arith.constant 0 : i32
    return %c0_i32, %c0_i32_0 : i32, i32
  }
  func.func @transform_14(%arg0: i32) -> (i32, i32) {
    %c0_i32 = arith.constant 0 : i32
    %c0_i32_0 = arith.constant 0 : i32
    %c0_i32_1 = arith.constant 0 : i32
    return %c0_i32, %c0_i32_0 : i32, i32
  }
  func.func @transform_15(%arg0: i32) -> (i32, i32) {
    %c0_i32 = arith.constant 0 : i32
    %c0_i32_0 = arith.constant 0 : i32
    return %arg0, %c0_i32 : i32, i32
  }
}

</mosaic_0001>

<bundles_post_ra>
// kernel: forward.1
= control target key start
LH: loop header
LB: loop body
LE: loop exit
PB: predicated region body
PF: predicated region fallthrough
CT: control target
= control target key end

     0   :  { %20 = vsyncpa [#allocation3], 0  ;;  %s1162_s0 = inlined_call_operand.vmem [shape: f32[8,128], index: 0, kind: input, shape index: {}]   ;;  %s1163_s1 = inlined_call_operand.hbm [shape: bf16[128,128], index: 1, kind: input, shape index: {}]   ;;  %s1164_s2 = inlined_call_operand.vmem [shape: f32[1,128], index: 2, kind: input, shape index: {}]   ;;  %s1165_s3 = inlined_call_operand.vmem [shape: f32[1,128], index: 3, kind: input, shape index: {}]   ;;  %s1166_s4 = inlined_call_operand.vmem [shape: f32[1,128], index: 4, kind: input, shape index: {}]   ;;  %s1167_s5 = inlined_call_operand.hbm [shape: bf16[128,128], index: 5, kind: input, shape index: {}]   ;;  %s1168_s6 = inlined_call_operand.vmem [shape: f32[1,128], index: 6, kind: input, shape index: {}]   ;;  %s1169_s7 = inlined_call_operand.vmem [shape: f32[1,128], index: 7, kind: input, shape index: {}]   ;;  %s1170_s8 = inlined_call_operand.vmem [shape: f32[1,128], index: 8, kind: input, shape index: {}]   ;;  %s1171_s9 = inlined_call_operand.hbm [shape: bf16[128,128], index: 9, kind: input, shape index: {}]   ;;  %s1172_s10 = inlined_call_operand.vmem [shape: f32[1,128], index: 10, kind: input, shape index: {}]   ;;  %s1173_s11 = inlined_call_operand.vmem [shape: f32[1,128], index: 11, kind: input, shape index: {}]   ;;  %s1174_s12 = inlined_call_operand.vmem [shape: f32[1,128], index: 12, kind: input, shape index: {}]   ;;  %s1175_s13 = inlined_call_operand.hbm [shape: bf16[128,128], index: 13, kind: input, shape index: {}]   ;;  %s1176_s14 = inlined_call_operand.vmem [shape: f32[1,128], index: 14, kind: input, shape index: {}]   ;;  %s1177_s15 = inlined_call_operand.vmem [shape: f32[8,128], index: 15, kind: output, shape index: {}]  }
   0x1   :  { %21 = vsyncpa [#allocation5], 0 }
   0x2   :  { %22 = vsyncpa [#allocation8], 0  ;;  %s969_s18 = smov [#allocation4]   ;;  %s970_s20 = smov [#allocation2]  }
   0x3   :  { %s48_s19 = sshll.u32 %s969_s18, 4  ;;  %s30_s21 = sshll.u32 %s970_s20, 4  ;;  %s49_s19 = int_to_ptr.vmem [resolvable:$true] %s48_s19  ;;  %s31_s21 = int_to_ptr.vmem [resolvable:$true] %s30_s21 }
   0x4   :  { %s891_s22 = scalar_lea.vmem %s49_s19, 1024  ;;  %p896_p1 = scmp.lt.s32.totalorder %s49_s19, %s49_s19 }
   0x5   :  { %p892_p0 = scmp.ne.s32.totalorder %s49_s19, %s891_s22  ;;  %p897_p2 = scmp.lt.s32.totalorder %s891_s22, %s891_s22 }
   0x7   :  { %p898_p3 = por %p897_p2, %p896_p1 }
   0x9   :  { %p899_p4 = pnand %p898_p3, %p892_p0 }
   0xb   :  { %902 = shalt.err (!%p899_p4)
}
   0xc   :  { %s971_s23 = smov 64   ;;  %s972_s24 = smov 4  }
   0xd   :  { %54 = dma.hbm_to_vmem [thread:$0]  %s1167_s5, 1024, %s49_s19, [#allocation5], %s971_s23, %s971_s23, %s972_s24  }
   0xe   :  { %s911_s27 = scalar_lea.vmem %s31_s21, 1024  ;;  %p916_p6 = scmp.lt.s32.totalorder %s31_s21, %s31_s21 }
   0xf   :  { %p912_p5 = scmp.ne.s32.totalorder %s31_s21, %s911_s27  ;;  %p917_p7 = scmp.lt.s32.totalorder %s911_s27, %s911_s27 }
  0x11   :  { %p918_p8 = por %p917_p7, %p916_p6 }
  0x13   :  { %p919_p9 = pnand %p918_p8, %p912_p5 }
  0x15   :  { %922 = shalt.err (!%p919_p9)
}
  0x16   :  { %36 = dma.hbm_to_vmem [thread:$0]  %s1163_s1, 1024, %s31_s21, [#allocation3], %s971_s23, %s971_s23, %s972_s24  }
  0x17   :  { %s973_s30 = smov [#allocation6]   ;;  %s974_s17 = smov [#allocation7]  }
  0x18   :  { %s66_s16 = sshll.u32 %s973_s30, 4  ;;  %s84_s18 = sshll.u32 %s974_s17, 4  ;;  %s67_s16 = int_to_ptr.vmem [resolvable:$true] %s66_s16  ;;  %s85_s18 = int_to_ptr.vmem [resolvable:$true] %s84_s18 }
  0x19   :  { %s931_s5 = scalar_lea.vmem %s67_s16, 1024  ;;  %p936_p11 = scmp.lt.s32.totalorder %s67_s16, %s67_s16 }
  0x1a   :  { %p932_p10 = scmp.ne.s32.totalorder %s67_s16, %s931_s5  ;;  %p937_p12 = scmp.lt.s32.totalorder %s931_s5, %s931_s5 }
  0x1c   :  { %p938_p13 = por %p937_p12, %p936_p11 }
  0x1e   :  { %p939_p0 = pnand %p938_p13, %p932_p10 }
  0x20   :  { %942 = shalt.err (!%p939_p0)
}
  0x21   :  { %72 = dma.hbm_to_vmem [thread:$0]  %s1171_s9, 1024, %s67_s16, [#allocation5], %s971_s23, %s971_s23, %s972_s24  }
  0x22   :  { %s951_s1 = scalar_lea.vmem %s85_s18, 1024  ;;  %p956_p2 = scmp.lt.s32.totalorder %s85_s18, %s85_s18 }
  0x23   :  { %p952_p1 = scmp.ne.s32.totalorder %s85_s18, %s951_s1  ;;  %p957_p3 = scmp.lt.s32.totalorder %s951_s1, %s951_s1 }
  0x25   :  { %p958_p4 = por %p957_p3, %p956_p2 }
  0x27   :  { %p959_p5 = pnand %p958_p4, %p952_p1 }
  0x29   :  { %962 = shalt.err (!%p959_p5)
}
  0x2a   :  { %90 = dma.hbm_to_vmem [thread:$0]  %s1175_s13, 1024, %s85_s18, [#allocation8], %s971_s23, %s971_s23, %s972_s24  }
  0x2b   :  { %963 = dma.done.wait [#allocation3], 1024  }
  0x2c   :  { %964 = vsyncadd [#allocation3], 4294966272 }
  0x2d   :  { %965 = dma.done.wait [#allocation5], 2048  }
  0x2e   :  { %966 = vsyncadd [#allocation5], 4294965248 }
  0x2f   :  { %967 = dma.done.wait [#allocation8], 1024  }
  0x30   :  { %968 = vsyncadd [#allocation8], 4294966272  ;;  %v975_v0 = vmov 0.0   ;;  %vm976_vm0 = vmmov 0   ;;  %v839_v1 = vld [vmem:[#allocation2 + $0x38] sm:$0xff]   ;;  %v840_v2 = vld [vmem:[#allocation2 + $0x30] sm:$0xff]   ;;  %v222_v17 = vlaneseq }
  0x31   :  { %751 = vmatprep.subr.bf16.mxu0 %v975_v0  ;;  %767 = vmatprep.mubr.msk.bf16.mxu0 %vm976_vm0, %v975_v0  ;;  %v841_v3 = vld [vmem:[#allocation2 + $0x28] sm:$0xff]   ;;  %v842_v4 = vld [vmem:[#allocation2 + $0x20] sm:$0xff]   ;;  %v843_v5 = vld [vmem:[#allocation2 + $0x18] sm:$0xff]  }
  0x32   :  { %771 = vmatprep.subr.bf16.mxu1 %v975_v0  ;;  %787 = vmatprep.mubr.msk.bf16.mxu1 %vm976_vm0, %v975_v0  ;;  %v844_v6 = vld [vmem:[#allocation2 + $0x10] sm:$0xff]   ;;  %v845_v7 = vld [vmem:[#allocation2 + $0x8] sm:$0xff]   ;;  %v846_v8 = vld [vmem:[#allocation2] sm:$0xff]   ;;  %v1103_v18 = vand.u32 127, %v222_v17 }
  0x33   :  { %752 = vmatpush3.bf16.msra.mxu0 %v839_v1  ;;  %v106_v9 = vld [vmem:[%s1162_s0] sm:$0xff]  ;;  %v847_v24 = vld [vmem:[#allocation4 + $0x38] sm:$0xff]   ;;  %v848_v25 = vld [vmem:[#allocation4 + $0x30] sm:$0xff]  }
  0x34   :  { %753 = vmatprep.subr.bf16.mxu0 %v975_v0  ;;  %v107_v10 = vpack.c.bf16 %v106_v9, %v106_v9  ;;  %v673_v11 = vld [vmem:[%s1164_s2] ss:$0 sm:$0xff]  ;;  %vm224_vm1 = vcmp.lt.s32.totalorder %v1103_v18, 64  ;;  %772 = vmatpush3.bf16.msra.mxu1 %v847_v24  ;;  %v849_v26 = vld [vmem:[#allocation4 + $0x28] sm:$0xff]   ;;  %v851_v28 = vld [vmem:[#allocation4 + $0x18] sm:$0xff]   ;;  %vm372_vm2 = vcmp.lt.s32.totalorder %v1103_v18, 48 }
  0x35   :  { %773 = vmatprep.subr.bf16.mxu1 %v975_v0  ;;  %v850_v27 = vld [vmem:[#allocation4 + $0x20] sm:$0xff]   ;;  %v852_v29 = vld [vmem:[#allocation4 + $0x10] sm:$0xff]   ;;  %v853_v30 = vld [vmem:[#allocation4 + $0x8] sm:$0xff]   ;;  %vm520_vm3 = vcmp.lt.s32.totalorder %v1103_v18, 32 }
  0x36   :  { %v854_v31 = vld [vmem:[#allocation4] sm:$0xff]   ;;  %v855_v58 = vld [vmem:[#allocation6 + $0x38] sm:$0xff]   ;;  %v856_v59 = vld [vmem:[#allocation6 + $0x30] sm:$0xff]  }
  0x37   :  { %754 = vmatpush3.bf16.msra.mxu0 %v840_v2  ;;  %v682_v35 = vld [vmem:[%s1165_s3] ss:$0 sm:$0xff]  ;;  %v857_v60 = vld [vmem:[#allocation6 + $0x28] sm:$0xff]   ;;  %v859_v62 = vld [vmem:[#allocation6 + $0x18] sm:$0xff]  }
  0x38   :  { %755 = vmatprep.subr.bf16.mxu0 %v975_v0  ;;  %774 = vmatpush3.bf16.msra.mxu1 %v848_v25  ;;  %v683_v38 = vld [vmem:[%s1166_s4] ss:$0 sm:$0xff]  ;;  %v860_v63 = vld [vmem:[#allocation6 + $0x10] sm:$0xff]   ;;  %v861_v1 = vld [vmem:[#allocation6 + $0x8] sm:$0xff]  }
  0x39   :  { %775 = vmatprep.subr.bf16.mxu1 %v975_v0  ;;  %v684_v47 = vld [vmem:[%s1168_s6] ss:$0 sm:$0xff]  ;;  %v868_v18 = vld [vmem:[#allocation7 + $0x10] sm:$0xff]  }
  0x3a   :  { %v858_v61 = vld [vmem:[#allocation6 + $0x20] sm:$0xff]  }
  0x3b   :  { %756 = vmatpush3.bf16.msra.mxu0 %v841_v3  ;;  %v862_v2 = vld [vmem:[#allocation6] sm:$0xff]  }
  0x3c   :  { %757 = vmatprep.subr.bf16.mxu0 %v975_v0  ;;  %776 = vmatpush3.bf16.msra.mxu1 %v849_v26  ;;  %v694_v9 = vld [vmem:[%s1170_s8] ss:$0 sm:$0xff] }
  0x3d   :  { %777 = vmatprep.subr.bf16.mxu1 %v975_v0 }
  0x3f   :  { %758 = vmatpush3.bf16.msra.mxu0 %v842_v4 }
  0x40   :  { %759 = vmatprep.subr.bf16.mxu0 %v975_v0  ;;  %778 = vmatpush3.bf16.msra.mxu1 %v850_v27 }
  0x41   :  { %779 = vmatprep.subr.bf16.mxu1 %v975_v0 }
  0x43   :  { %760 = vmatpush3.bf16.msra.mxu0 %v843_v5 }
  0x44   :  { %761 = vmatprep.subr.bf16.mxu0 %v975_v0  ;;  %780 = vmatpush3.bf16.msra.mxu1 %v851_v28 }
  0x45   :  { %781 = vmatprep.subr.bf16.mxu1 %v975_v0 }
  0x47   :  { %762 = vmatpush3.bf16.msra.mxu0 %v844_v6  ;;  %v693_v6 = vld [vmem:[%s1169_s7] ss:$0 sm:$0xff] }
  0x48   :  { %763 = vmatprep.subr.bf16.mxu0 %v975_v0  ;;  %782 = vmatpush3.bf16.msra.mxu1 %v852_v29 }
  0x49   :  { %783 = vmatprep.subr.bf16.mxu1 %v975_v0 }
  0x4b   :  { %764 = vmatpush3.bf16.msra.mxu0 %v845_v7 }
  0x4c   :  { %765 = vmatprep.subr.bf16.mxu0 %v975_v0  ;;  %784 = vmatpush3.bf16.msra.mxu1 %v853_v30  ;;  %v863_v30 = vld [vmem:[#allocation7 + $0x38] sm:$0xff]  }
  0x4d   :  { %785 = vmatprep.subr.bf16.mxu1 %v975_v0 }
  0x4f   :  { %766 = vmatpush3.bf16.msra.mxu0 %v846_v8 }
  0x50   :  { %791 = vmatprep.subr.bf16.mxu0 %v975_v0  ;;  %786 = vmatpush3.bf16.msra.mxu1 %v854_v31  ;;  %v864_v31 = vld [vmem:[#allocation7 + $0x30] sm:$0xff]  }
  0x51   :  { %811 = vmatprep.subr.bf16.mxu1 %v975_v0 }
  0x52   :  { %768 = vmatmul.mubr.bf16.vlgmr.msra.gmra.mxu0 %v107_v10 }
  0x53   :  { %807 = vmatprep.mubr.msk.bf16.mxu0 %vm976_vm0, %v975_v0  ;;  %792 = vmatpush3.bf16.msra.mxu0 %v855_v58 }
  0x54   :  { %793 = vmatprep.subr.bf16.mxu0 %v975_v0 }
  0x57   :  { %794 = vmatpush3.bf16.msra.mxu0 %v856_v59 }
  0x58   :  { %795 = vmatprep.subr.bf16.mxu0 %v975_v0 }
  0x5b   :  { %796 = vmatpush3.bf16.msra.mxu0 %v857_v60 }
  0x5c   :  { %797 = vmatprep.subr.bf16.mxu0 %v975_v0 }
  0x5f   :  { %798 = vmatpush3.bf16.msra.mxu0 %v858_v61 }
  0x60   :  { %799 = vmatprep.subr.bf16.mxu0 %v975_v0 }
  0x63   :  { %800 = vmatpush3.bf16.msra.mxu0 %v859_v62 }
  0x64   :  { %801 = vmatprep.subr.bf16.mxu0 %v975_v0 }
  0x67   :  { %802 = vmatpush3.bf16.msra.mxu0 %v860_v63 }
  0x68   :  { %803 = vmatprep.subr.bf16.mxu0 %v975_v0 }
  0x6b   :  { %804 = vmatpush3.bf16.msra.mxu0 %v861_v1 }
  0x6c   :  { %805 = vmatprep.subr.bf16.mxu0 %v975_v0 }
  0x6f   :  { %806 = vmatpush3.bf16.msra.mxu0 %v862_v2 }
 0x112   :  { %v213_v12 = vpop.f32.mrf.mxu0 }
 0x113   :  { %v214_v13 = vadd.f32 %v673_v11, %v213_v12 }
 0x114   :  { %v769_v14 = vpop.f32.mrf.mxu0 }
 0x115   :  { %219 = vadd.xlane.f32.xlu0 %v214_v13 }
 0x116   :  { %v216_v15 = vpop.f32.mrf.mxu0 }
 0x118   :  { %v770_v16 = vpop.f32.mrf.mxu0 }
 0x19e   :  { %v220_v19 = vpop.xlane.xlu0 %219 }
 0x19f   :  { %v221_v20 = vmul.f32 0.015625, %v220_v19  ;;  %v695_v19 = vld [vmem:[%s1172_s10] ss:$0 sm:$0xff] }
 0x1a1   :  { %v225_v21 = vsub.f32 %v214_v13, %v221_v20 }
 0x1a3   :  { %v228_v22 = vsel %vm224_vm1, %v225_v21, 0.0 }
 0x1a4   :  { %v229_v23 = vmul.f32 %v228_v22, %v228_v22 }
 0x1a6   :  { %230 = vadd.xlane.f32.xlu0 %v229_v23 }
 0x22f   :  { %v231_v32 = vpop.xlane.xlu0 %230 }
 0x230   :  { %v232_v33 = vmul.f32 0.015625, %v231_v32  ;;  %v865_v32 = vld [vmem:[#allocation7 + $0x28] sm:$0xff]  }
 0x232   :  { %v233_v34 = vadd.f32 1e-05, %v232_v33  ;;  %v866_v33 = vld [vmem:[#allocation7 + $0x20] sm:$0xff]  }
 0x234   :  { %871 = vrsqrt.f32 %v233_v34  ;;  %v867_v34 = vld [vmem:[#allocation7 + $0x18] sm:$0xff]  }
 0x241   :  { %v872_v36 = vpop.eup %871 }
 0x242   :  { %v242_v37 = vmul.f32 %v872_v36, %v682_v35  ;;  %v869_v35 = vld [vmem:[#allocation7 + $0x8] sm:$0xff]   ;;  %v870_v36 = vld [vmem:[#allocation7] sm:$0xff]  }
 0x244   :  { %v243_v39 = vmul.f32 %v242_v37, %v228_v22 }
 0x246   :  { %v251_v40 = vadd.f32 %v683_v38, %v243_v39 }
 0x248   :  { %v253_v41 = vmul.f32 0.70710677, %v251_v40  ;;  %v252_v43 = vmul.f32 0.5, %v251_v40  ;;  %v704_v40 = vld [vmem:[%s1173_s11] ss:$0 sm:$0xff] }
 0x24a   :  { %873 = verf.f32 %v253_v41 }
 0x257   :  { %v874_v42 = vpop.eup %873 }
 0x258   :  { %v255_v44 = vadd.f32 1.0, %v874_v42 }
 0x25a   :  { %v256_v45 = vmul.f32 %v255_v44, %v252_v43  ;;  %v705_v43 = vld [vmem:[%s1174_s12] ss:$0 sm:$0xff] }
 0x25c   :  { %v257_v46 = vpack.c.bf16 %v256_v45, %v256_v45 }
 0x25e   :  { %788 = vmatmul.mubr.bf16.vlgmr.msra.gmra.mxu1 %v257_v46 }
 0x25f   :  { %827 = vmatprep.mubr.msk.bf16.mxu1 %vm976_vm0, %v975_v0  ;;  %812 = vmatpush3.bf16.msra.mxu1 %v863_v30 }
 0x260   :  { %813 = vmatprep.subr.bf16.mxu1 %v975_v0 }
 0x263   :  { %814 = vmatpush3.bf16.msra.mxu1 %v864_v31 }
 0x264   :  { %815 = vmatprep.subr.bf16.mxu1 %v975_v0 }
 0x267   :  { %816 = vmatpush3.bf16.msra.mxu1 %v865_v32 }
 0x268   :  { %817 = vmatprep.subr.bf16.mxu1 %v975_v0 }
 0x26b   :  { %818 = vmatpush3.bf16.msra.mxu1 %v866_v33 }
 0x26c   :  { %819 = vmatprep.subr.bf16.mxu1 %v975_v0 }
 0x26f   :  { %820 = vmatpush3.bf16.msra.mxu1 %v867_v34 }
 0x270   :  { %821 = vmatprep.subr.bf16.mxu1 %v975_v0 }
 0x273   :  { %822 = vmatpush3.bf16.msra.mxu1 %v868_v18 }
 0x274   :  { %823 = vmatprep.subr.bf16.mxu1 %v975_v0 }
 0x277   :  { %824 = vmatpush3.bf16.msra.mxu1 %v869_v35 }
 0x278   :  { %825 = vmatprep.subr.bf16.mxu1 %v975_v0 }
 0x27b   :  { %826 = vmatpush3.bf16.msra.mxu1 %v870_v36 }
 0x31e   :  { %v363_v48 = vpop.f32.mrf.mxu1 }
 0x31f   :  { %v364_v49 = vadd.f32 %v684_v47, %v363_v48 }
 0x320   :  { %v789_v50 = vpop.f32.mrf.mxu1 }
 0x321   :  { %369 = vadd.xlane.f32.xlu1 %v364_v49 }
 0x322   :  { %v366_v51 = vpop.f32.mrf.mxu1 }
 0x323   :  { %v706_v51 = vld [vmem:[%s1176_s14] ss:$0 sm:$0xff] }
 0x324   :  { %v790_v52 = vpop.f32.mrf.mxu1 }
 0x3aa   :  { %v370_v53 = vpop.xlane.xlu1 %369 }
 0x3ab   :  { %v371_v54 = vmul.f32 0.020833334, %v370_v53 }
 0x3ad   :  { %v373_v55 = vsub.f32 %v364_v49, %v371_v54 }
 0x3af   :  { %v376_v56 = vsel %vm372_vm2, %v373_v55, 0.0 }
 0x3b0   :  { %v377_v57 = vmul.f32 %v376_v56, %v376_v56 }
 0x3b2   :  { %378 = vadd.xlane.f32.xlu1 %v377_v57 }
 0x43b   :  { %v379_v3 = vpop.xlane.xlu1 %378 }
 0x43c   :  { %v380_v4 = vmul.f32 0.020833334, %v379_v3 }
 0x43e   :  { %v381_v5 = vadd.f32 1e-05, %v380_v4 }
 0x440   :  { %875 = vrsqrt.f32 %v381_v5 }
 0x44d   :  { %v876_v7 = vpop.eup %875 }
 0x44e   :  { %v390_v8 = vmul.f32 %v876_v7, %v693_v6 }
 0x450   :  { %v391_v10 = vmul.f32 %v390_v8, %v376_v56 }
 0x452   :  { %v399_v11 = vadd.f32 %v694_v9, %v391_v10 }
 0x454   :  { %v401_v12 = vmul.f32 0.70710677, %v399_v11  ;;  %v400_v14 = vmul.f32 0.5, %v399_v11 }
 0x456   :  { %877 = verf.f32 %v401_v12 }
 0x463   :  { %v878_v13 = vpop.eup %877 }
 0x464   :  { %v403_v15 = vadd.f32 1.0, %v878_v13 }
 0x466   :  { %v404_v16 = vmul.f32 %v403_v15, %v400_v14 }
 0x468   :  { %v405_v17 = vpack.c.bf16 %v404_v16, %v404_v16 }
 0x46a   :  { %808 = vmatmul.mubr.bf16.vlgmr.msra.gmra.mxu0 %v405_v17 }
 0x52a   :  { %v511_v20 = vpop.f32.mrf.mxu0 }
 0x52b   :  { %v512_v21 = vadd.f32 %v695_v19, %v511_v20 }
 0x52c   :  { %v809_v22 = vpop.f32.mrf.mxu0 }
 0x52d   :  { %517 = vadd.xlane.f32.xlu0 %v512_v21 }
 0x52e   :  { %v514_v23 = vpop.f32.mrf.mxu0 }
 0x530   :  { %v810_v24 = vpop.f32.mrf.mxu0 }
 0x5b6   :  { %v518_v25 = vpop.xlane.xlu0 %517 }
 0x5b7   :  { %v519_v26 = vmul.f32 0.03125, %v518_v25 }
 0x5b9   :  { %v521_v27 = vsub.f32 %v512_v21, %v519_v26 }
 0x5bb   :  { %v524_v28 = vsel %vm520_vm3, %v521_v27, 0.0 }
 0x5bc   :  { %v525_v29 = vmul.f32 %v524_v28, %v524_v28 }
 0x5be   :  { %526 = vadd.xlane.f32.xlu1 %v525_v29 }
 0x647   :  { %v527_v37 = vpop.xlane.xlu1 %526 }
 0x648   :  { %v528_v38 = vmul.f32 0.03125, %v527_v37 }
 0x64a   :  { %v529_v39 = vadd.f32 1e-05, %v528_v38 }
 0x64c   :  { %879 = vrsqrt.f32 %v529_v39 }
 0x659   :  { %v880_v41 = vpop.eup %879 }
 0x65a   :  { %v538_v42 = vmul.f32 %v880_v41, %v704_v40 }
 0x65c   :  { %v539_v44 = vmul.f32 %v538_v42, %v524_v28 }
 0x65e   :  { %v547_v45 = vadd.f32 %v705_v43, %v539_v44 }
 0x660   :  { %v549_v46 = vmul.f32 0.70710677, %v547_v45  ;;  %v548_v47 = vmul.f32 0.5, %v547_v45 }
 0x662   :  { %881 = verf.f32 %v549_v46 }
 0x66f   :  { %v882_v0 = vpop.eup %881 }
 0x670   :  { %v551_v48 = vadd.f32 1.0, %v882_v0 }
 0x672   :  { %v552_v49 = vmul.f32 %v551_v48, %v548_v47 }
 0x674   :  { %v553_v50 = vpack.c.bf16 %v552_v49, %v552_v49 }
 0x676   :  { %828 = vmatmul.mubr.bf16.vlgmr.msra.gmra.mxu1 %v553_v50 }
 0x736   :  { %v659_v52 = vpop.f32.mrf.mxu1 }
 0x737   :  { %v660_v53 = vadd.f32 %v706_v51, %v659_v52 }
 0x738   :  { %v829_v54 = vpop.f32.mrf.mxu1 }
 0x739   :  { %665 = vst [vmem:[%s1177_s15] sm:$0xff] %v660_v53 }
 0x73a   :  { %v662_v55 = vpop.f32.mrf.mxu1 }
 0x73c   :  { %v830_v56 = vpop.f32.mrf.mxu1 }
 0x73d   :  { %670 = vsyncpa [#allocation3], 1 }
 0x73e   :  { %671 = vsyncpa [#allocation5], 1 }
 0x73f   :  { %672 = vsyncpa [#allocation8], 1 }

</bundles_post_ra>
